<compile_context>
chip_gen: v7x
topology: tpu7x:2x2x1
jax: 0.10.0
libtpu: 0.0.40
codegen_flags: <defaults>
</compile_context>

<pallas_src>
import functools

import jax
import jax.numpy as jnp
from jax.experimental import pallas as pl
from jax.experimental.pallas import tpu as pltpu


def _round_up(x, m):
    return (x + m - 1) // m * m


def _pick_tm(M, target=1024):
    """M tile: big (512-1024) to amortize per-step overhead, divisor of M if possible."""
    if M <= target:
        return M                      # single tile, block == full dim (always legal)
    for step in (256, 16):            # prefer MXU-tile multiples, then bf16 packing
        for tm in range(target, 255, -step):
            if M % tm == 0:
                return tm             # exact tiling: no masked tile, no padding
    return target                     # fall back: cdiv grid, masked partial last tile


def _vmem_limit_bytes(needed):
    """Scoped-VMEM request: actual footprint + headroom, <= 75% of chip VMEM."""
    try:
        cap = int(pltpu.get_tpu_info().vmem_capacity_bytes)
    except Exception:
        cap = 64 << 20                # conservative: v7x has 64 MiB per TensorCore
    return int(max(min(needed + (8 << 20), (cap * 3) // 4), 16 << 20))


def _resident_spec(block_shape, index_map):
    """BlockSpec for an operand with a constant index_map: single pipeline buffer."""
    if hasattr(pl, "Buffered"):
        try:
            return pl.BlockSpec(block_shape, index_map, pipeline_mode=pl.Buffered(1))
        except TypeError:             # older signature without pipeline_mode
            pass
    return pl.BlockSpec(block_shape, index_map)


def _patch_embed_kernel(p_ref, w_ref, b_ref, o_ref):
    # p_ref: (TM, K) bf16 patch rows; w_ref: (K, Ep) bf16 (resident, 1 buffer);
    # b_ref: (1, Ep) f32 (resident); o_ref: (TM, Ep) out_dtype.
    acc = jnp.dot(p_ref[...], w_ref[...], preferred_element_type=jnp.float32)
    o_ref[...] = (acc + b_ref[...]).astype(o_ref.dtype)


def patch_embedding(x, weight, bias, patch_size, *,
                    out_dtype=jnp.bfloat16, compute_dtype=jnp.bfloat16):
    """x: (B, C, H, W); weight: (E, C, ph, pw) [PyTorch OIHW]; bias: (E,)."""
    ph, pw = patch_size
    B, C, H, W = x.shape
    E = weight.shape[0]
    Hp, Wp = H // ph, W // pw
    num_patches = Hp * Wp
    K = C * ph * pw
    M = B * num_patches

    TM = _pick_tm(M)
    grid_m = pl.cdiv(M, TM)
    K_pad = K if K % 128 == 0 else _round_up(K, 128)
    E_pad = E if E % 128 == 0 else _round_up(E, 128)

    # ---- wrapper-side glue (fuses into one pass over x under jit) ----------
    # TODO(synk): move this patch gather into the kernel (see header note).
    p = x.astype(compute_dtype).reshape(B, C, Hp, ph, Wp, pw)
    p = p.transpose(0, 2, 4, 1, 3, 5).reshape(M, K)          # (M, K), (c,kh,kw) minor
    if K_pad != K:
        p = jnp.pad(p, ((0, 0), (0, K_pad - K)))

    # One-time O(K*E) weight reorder: OIHW -> (K, E); flatten order matches p.
    w2d = weight.reshape(E, K).T.astype(compute_dtype)       # (K, E)
    b2d = bias.reshape(1, E).astype(jnp.float32)
    if K_pad != K:
        w2d = jnp.pad(w2d, ((0, K_pad - K), (0, 0)))
    if E_pad != E:
        w2d = jnp.pad(w2d, ((0, 0), (0, E_pad - E)))
        b2d = jnp.pad(b2d, ((0, 0), (0, E_pad - E)))

    in_isz = jnp.dtype(compute_dtype).itemsize
    out_isz = jnp.dtype(out_dtype).itemsize
    needed = (2 * TM * K_pad * in_isz          # double-buffered patch tiles
              + K_pad * E_pad * in_isz         # resident weight (single buffer)
              + E_pad * 4                      # resident bias
              + 2 * TM * E_pad * out_isz)      # double-buffered output tiles
    vmem_limit = _vmem_limit_bytes(needed)

    cost = pl.CostEstimate(
        flops=2 * M * K_pad * E_pad,
        transcendentals=0,
        bytes_accessed=(M * K_pad * in_isz + K_pad * E_pad * in_isz
                        + E_pad * 4 + M * E_pad * out_isz),
    )

    out = pl.pallas_call(
        _patch_embed_kernel,
        out_shape=jax.ShapeDtypeStruct((M, E_pad), out_dtype),
        grid_spec=pltpu.PrefetchScalarGridSpec(
            num_scalar_prefetch=0,
            grid=(grid_m,),
            in_specs=[
                pl.BlockSpec((TM, K_pad), lambda i: (i, 0)),        # streamed patches
                _resident_spec((K_pad, E_pad), lambda i: (0, 0)),   # resident weight
                _resident_spec((1, E_pad), lambda i: (0, 0)),       # resident bias
            ],
            out_specs=pl.BlockSpec((TM, E_pad), lambda i: (i, 0)),
        ),
        compiler_params=pltpu.CompilerParams(
            dimension_semantics=("parallel",),   # M tiles split across TensorCores
            vmem_limit_bytes=vmem_limit,
        ),
        cost_estimate=cost,
    )(p, w2d, b2d)

    if E_pad != E:
        out = out[:, :E]
    return out.reshape(B, num_patches, E)


if __name__ == "__main__":
    # Small shapes consistent with the module: img 16x16, patch 8, embed 32.
    B, C, H, W = 2, 4, 16, 16
    ph = pw = 8
    E = 32

    key = jax.random.PRNGKey(0)
    kx, kw, kb = jax.random.split(key, 3)
    x = jax.random.normal(kx, (B, C, H, W), dtype=jnp.float32)
    weight = jax.random.normal(kw, (E, C, ph, pw), dtype=jnp.float32) * 0.02
    bias = jax.random.normal(kb, (E,), dtype=jnp.float32) * 0.02

    fn = jax.jit(functools.partial(patch_embedding, patch_size=(ph, pw)))
    out = jax.block_until_ready(fn(x, weight, bias))

    # Reference: lax conv (same semantics as nn.Conv2d stride=kernel followed
    # by flatten(2).transpose(1,2)), with the same bf16 input rounding so only
    # accumulation-order and output-cast differences remain.
    xr = x.astype(jnp.bfloat16).astype(jnp.float32)
    wr = weight.astype(jnp.bfloat16).astype(jnp.float32)
    ref = jax.lax.conv_general_dilated(
        xr, wr, window_strides=(ph, pw), padding="VALID",
        dimension_numbers=("NCHW", "OIHW", "NCHW"),
        precision=jax.lax.Precision.HIGHEST)
    ref = ref + bias.reshape(1, E, 1, 1)
    ref = ref.reshape(B, E, -1).transpose(0, 2, 1)

    assert out.shape == (B, (H // ph) * (W // pw), E)
    assert out.dtype == jnp.bfloat16
    err = float(jnp.max(jnp.abs(out.astype(jnp.float32) - ref)))
    assert err < 2e-2, err

    print("KERNEL_OK")
</pallas_src>

<mosaic_0001>
module attributes {stable_mosaic.version = 11 : i64} {
  func.func @_patch_embed_kernel(%arg0: i32, %arg1: memref<8x256xbf16, #tpu.memory_space<vmem>>, %arg2: memref<256x128xbf16, #tpu.memory_space<vmem>>, %arg3: memref<1x128xf32, #tpu.memory_space<vmem>>, %arg4: memref<8x128xbf16, #tpu.memory_space<vmem>>) attributes {dimension_semantics = [#tpu.dimension_semantics<parallel>], iteration_bounds = array<i64: 1>, scalar_prefetch = 0 : i64, scratch_operands = 0 : i64, tpu.core_type = #tpu.core_type<tc>, window_params = [{transform_indices = @transform_0, window_bounds = array<i64: 8, 256>}, {pipeline_mode = #tpu.pipeline_mode<synchronous>, transform_indices = @transform_1, window_bounds = array<i64: 256, 128>}, {pipeline_mode = #tpu.pipeline_mode<synchronous>, transform_indices = @transform_2, window_bounds = array<i64: 1, 128>}, {transform_indices = @transform_3, window_bounds = array<i64: 8, 128>}]} {
    %c0 = arith.constant 0 : index
    %c0_0 = arith.constant 0 : index
    %0 = vector.load %arg1[%c0, %c0_0] : memref<8x256xbf16, #tpu.memory_space<vmem>>, vector<8x256xbf16>
    %c0_1 = arith.constant 0 : index
    %c0_2 = arith.constant 0 : index
    %1 = vector.load %arg2[%c0_1, %c0_2] : memref<256x128xbf16, #tpu.memory_space<vmem>>, vector<256x128xbf16>
    %cst = arith.constant dense<0.000000e+00> : vector<8x128xf32>
    %2 = tpu.matmul %0, %1, %cst {dimension_numbers = #tpu.dot_dimension_numbers<[1], [0], [0], [1], [0, 0, 1, 1], [], []>} : vector<8x256xbf16>, vector<256x128xbf16>, vector<8x128xf32> -> vector<8x128xf32>
    %c0_3 = arith.constant 0 : index
    %c0_4 = arith.constant 0 : index
    %3 = vector.load %arg3[%c0_3, %c0_4] : memref<1x128xf32, #tpu.memory_space<vmem>>, vector<1x128xf32>
    %4 = vector.broadcast %3 : vector<1x128xf32> to vector<8x128xf32>
    %5 = arith.addf %2, %4 : vector<8x128xf32>
    %6 = arith.truncf %5 : vector<8x128xf32> to vector<8x128xbf16>
    %c0_5 = arith.constant 0 : index
    %c0_6 = arith.constant 0 : index
    %7 = vector.load %arg4[%c0_5, %c0_6] : memref<8x128xbf16, #tpu.memory_space<vmem>>, vector<8x128xbf16>
    tpu.vector_store %arg4[%c0_5, %c0_6], %6 {strides = array<i32>} : memref<8x128xbf16, #tpu.memory_space<vmem>>, vector<8x128xbf16>,
    return
  }
  func.func @transform_0(%arg0: i32) -> (i32, i32) {
    %c0_i32 = arith.constant 0 : i32
    %c0_i32_0 = arith.constant 0 : i32
    return %arg0, %c0_i32 : i32, i32
  }
  func.func @transform_1(%arg0: i32) -> (i32, i32) {
    %c0_i32 = arith.constant 0 : i32
    %c0_i32_0 = arith.constant 0 : i32
    %c0_i32_1 = arith.constant 0 : i32
    return %c0_i32, %c0_i32_0 : i32, i32
  }
  func.func @transform_2(%arg0: i32) -> (i32, i32) {
    %c0_i32 = arith.constant 0 : i32
    %c0_i32_0 = arith.constant 0 : i32
    %c0_i32_1 = arith.constant 0 : i32
    return %c0_i32, %c0_i32_0 : i32, i32
  }
  func.func @transform_3(%arg0: i32) -> (i32, i32) {
    %c0_i32 = arith.constant 0 : i32
    %c0_i32_0 = arith.constant 0 : i32
    return %arg0, %c0_i32 : i32, i32
  }
}

</mosaic_0001>

<bundles_post_ra>
// kernel: patch_embedding.1
= control target key start
LH: loop header
LB: loop body
LE: loop exit
PB: predicated region body
PF: predicated region fallthrough
CT: control target
= control target key end

     0   :  { %s386_s0 = inlined_call_operand.vmem [shape: bf16[8,256], index: 0, kind: input, shape index: {}]   ;;  %s387_s1 = inlined_call_operand.vmem [shape: bf16[256,128], index: 1, kind: input, shape index: {}]   ;;  %s388_s2 = inlined_call_operand.vmem [shape: f32[1,128], index: 2, kind: input, shape index: {}]   ;;  %s389_s3 = inlined_call_operand.hbm [shape: bf16[8,128], index: 3, kind: output, shape index: {}]  }
   0x1   :  { %v257_v0 = vld [vmem:[%s387_s1 + $0x40] sm:$0xff]   ;;  %v259_v2 = vld [vmem:[%s387_s1 + $0x48] sm:$0xff]   ;;  %v261_v4 = vld [vmem:[%s387_s1 + $0x50] sm:$0xff]  }
   0x2   :  { %v258_v1 = vld [vmem:[%s387_s1] sm:$0xff]   ;;  %234 = vmatprep.subr.bf16.mxu0 %v257_v0  ;;  %v260_v3 = vld [vmem:[%s387_s1 + $0x8] sm:$0xff]   ;;  %v262_v5 = vld [vmem:[%s387_s1 + $0x10] sm:$0xff]  }
   0x3   :  { %235 = vmatpush3.bf16.msra.mxu0 %v258_v1  ;;  %v263_v6 = vld [vmem:[%s387_s1 + $0x58] sm:$0xff]   ;;  %v265_v8 = vld [vmem:[%s387_s1 + $0x60] sm:$0xff]   ;;  %v267_v10 = vld [vmem:[%s387_s1 + $0x68] sm:$0xff]  }
   0x4   :  { %236 = vmatprep.subr.bf16.mxu0 %v259_v2  ;;  %v264_v7 = vld [vmem:[%s387_s1 + $0x18] sm:$0xff]   ;;  %v266_v9 = vld [vmem:[%s387_s1 + $0x20] sm:$0xff]  }
   0x5   :  { %v16_v11 = vld [vmem:[%s386_s0] sm:$0xff] }
   0x7   :  { %237 = vmatpush3.bf16.msra.mxu0 %v260_v3 }
   0x8   :  { %238 = vmatprep.subr.bf16.mxu0 %v261_v4 }
   0xb   :  { %239 = vmatpush3.bf16.msra.mxu0 %v262_v5 }
   0xc   :  { %240 = vmatprep.subr.bf16.mxu0 %v263_v6 }
   0xf   :  { %241 = vmatpush3.bf16.msra.mxu0 %v264_v7 }
  0x10   :  { %242 = vmatprep.subr.bf16.mxu0 %v265_v8 }
  0x11   :  { %8 = vsyncpa [#allocation3], 0  ;;  %v217_v12 = vcombine.high %v16_v11, %v16_v11  ;;  %v268_v13 = vld [vmem:[%s387_s1 + $0x28] sm:$0xff]   ;;  %v269_v14 = vld [vmem:[%s387_s1 + $0x70] sm:$0xff]   ;;  %v216_v18 = vcombine.low %v16_v11, %v16_v11  ;;  %s299_s20 = smov [#allocation2]  }
  0x12   :  { %v270_v15 = vld [vmem:[%s387_s1 + $0x30] sm:$0xff]   ;;  %v271_v16 = vld [vmem:[%s387_s1 + $0x78] sm:$0xff]   ;;  %v215_v20 = vld [vmem:[%s388_s2] ss:$0 sm:$0xff]  ;;  %s207_s21 = sshll.u32 %s299_s20, 4  ;;  %s208_s21 = int_to_ptr.vmem [resolvable:$true] %s207_s21 }
  0x13   :  { %243 = vmatpush3.bf16.msra.mxu0 %v266_v9  ;;  %191 = vmatprep.mubr.bf16.mxu0 %v217_v12  ;;  %v272_v17 = vld [vmem:[%s387_s1 + $0x38] sm:$0xff]   ;;  %s275_s1 = scalar_lea.vmem %s208_s21, 64  ;;  %p280_p1 = scmp.lt.s32.totalorder %s208_s21, %s208_s21 }
  0x14   :  { %244 = vmatprep.subr.bf16.mxu0 %v267_v10  ;;  %p276_p0 = scmp.ne.s32.totalorder %s208_s21, %s275_s1  ;;  %p281_p2 = scmp.lt.s32.totalorder %s275_s1, %s275_s1 }
  0x16   :  { %p282_p3 = por %p281_p2, %p280_p1 }
  0x17   :  { %245 = vmatpush3.bf16.msra.mxu0 %v268_v13 }
  0x18   :  { %246 = vmatprep.subr.bf16.mxu0 %v269_v14  ;;  %p283_p4 = pnand %p282_p3, %p276_p0 }
  0x1b   :  { %247 = vmatpush3.bf16.msra.mxu0 %v270_v15 }
  0x1c   :  { %248 = vmatprep.subr.bf16.mxu0 %v271_v16 }
  0x1f   :  { %249 = vmatpush3.bf16.msra.mxu0 %v272_v17 }
  0x22   :  { %192 = vmatmul.mubr.bf16.vlgmr.msra.gmra.mrb[0].mxu0 %v216_v18 }
  0xf5   :  { %v250_v19 = vpop.f32.mrb[0].mxu0 }
  0xf6   :  { %v251_v21 = vpop.f32.mrb[1].mxu0 }
  0xf7   :  { %v252_v22 = vadd.f32 %v251_v21, %v250_v19  ;;  %v253_v23 = vpop.f32.mrb[2].mxu0 }
  0xf8   :  { %v254_v24 = vpop.f32.mrb[3].mxu0 }
  0xf9   :  { %v194_v25 = vadd.f32 %v252_v22, %v215_v20 }
  0xfb   :  { %v199_v26 = vpack.c.bf16 %v194_v25, %v194_v25 }
  0xfd   :  { %200 = vst [vmem:[#allocation2] sm:$0xf] %v199_v26 }
  0xfe   :  { %286 = shalt.err (!%p283_p4)
}
  0xff   :  { %s287_s2 = scalar_lea.hbm %s389_s3, 64 }
 0x100   :  { %p288_p5 = scmp.ne.s32.totalorder %s389_s3, %s287_s2  ;;  %p291_p6 = scmp.lt.u32.totalorder %s287_s2, %s389_s3 }
 0x102   :  { %p293_p7 = pnand %p291_p6, %p288_p5 }
 0x104   :  { %296 = shalt.err (!%p293_p7)
}
 0x105   :  { %210 = dma.vmem_to_hbm [thread:$0]  %s208_s21, 64, %s389_s3, [#allocation3]  }
 0x106   :  { %297 = dma.done.wait [#allocation3], 64  }
 0x107   :  { %298 = vsyncadd [#allocation3], 4294967232 }
 0x108   :  { %214 = vsyncpa [#allocation3], 1 }

</bundles_post_ra>
